<compile_context>
chip_gen: v6e
topology: v6e:2x2x1
jax: 0.10.0
libtpu: 0.0.40
codegen_flags: <defaults>
</compile_context>

<pallas_src>
import jax
import jax.numpy as jnp
from jax.experimental import pallas as pl
from jax.experimental.pallas import tpu as pltpu

NUM_CLASSES = 13
MAX_TILE_B = 2048
VMEM_LIMIT_BYTES = 40 << 20  # above 16/32 MiB scoped defaults, under physical VMEM everywhere
VMEM_TILE_BUDGET = 20 << 20  # target footprint for double-buffered per-step tiles


def _round_up(x, m):
    return ((x + m - 1) // m) * m


def _auto_tile_b(batch, img_dim, text_dim, img_itemsize, txt_itemsize):
    # Per-row bytes: double-buffered image + text input tiles, plus a
    # double-buffered output tile (13 lanes padded to 128, f32).
    per_row = 2 * (img_dim * img_itemsize + text_dim * txt_itemsize + 128 * 4)
    tile = VMEM_TILE_BUDGET // max(per_row, 1)
    tile = max(8, min(MAX_TILE_B, (tile // 8) * 8))
    return min(tile, _round_up(batch, 8))


def _ensemble_kernel(img_ref, txt_ref, wi_ref, wt_ref, b_ref, out_ref):
    # logits = txt @ Wt' + img @ Wi' + b'   (fused ensemble + output layer)
    logits = (
        jnp.dot(txt_ref[...], wt_ref[...], preferred_element_type=jnp.float32)
        + jnp.dot(img_ref[...], wi_ref[...], preferred_element_type=jnp.float32)
        + b_ref[...]
    )  # [TILE_B, 13] f32

    # softmax over dim=1 (rows)
    m = jnp.max(logits, axis=1, keepdims=True)
    e = jnp.exp(logits - m)
    denom = jnp.sum(e, axis=1, keepdims=True)
    out_ref[...] = e * pl.reciprocal(denom, approx=False)


def fuse_params(params):
    """Fold output_layer into the two heads ONCE (params are static at inference).

    text_head -> Linear(26,13)  collapses to  Wt' = wt @ wo[:13]
    image_head -> Linear(26,13) collapses to  Wi' = wi @ wo[13:]
    b' = bt @ wo[:13] + bi @ wo[13:] + bo
    """
    wo_t = params["wo"][:NUM_CLASSES, :]
    wo_i = params["wo"][NUM_CLASSES:, :]
    return {
        "wt_f": (params["wt"] @ wo_t).astype(jnp.float32),              # [TEXT_DIM, 13]
        "wi_f": (params["wi"] @ wo_i).astype(jnp.float32),              # [IMG_DIM, 13]
        "b_f": (params["bt"] @ wo_t + params["bi"] @ wo_i + params["bo"]
                ).reshape(1, NUM_CLASSES).astype(jnp.float32),          # [1, 13]
    }


def ensemble_forward(image_features, text_features, fused, tile_b=None):
    """image_features: [B, C, H, W] (NCHW); text_features: [B, TEXT_DIM].

    `fused` is the output of fuse_params(params) (precomputed once).
    Inputs are streamed in their native dtype (no wrapper-side upcast).
    """
    B = image_features.shape[0]
    img = image_features.reshape(B, -1)   # flatten NCHW (metadata-only reshape)
    txt = text_features
    img_dim = img.shape[1]
    text_dim = txt.shape[1]

    if tile_b is None:
        tile_b = _auto_tile_b(B, img_dim, text_dim,
                              img.dtype.itemsize, txt.dtype.itemsize)
    tile_b = max(8, min(_round_up(tile_b, 8), _round_up(B, 8)))

    # No padding copy: ragged last block handled by Pallas (masked output write).
    grid = (pl.cdiv(B, tile_b),)

    cost = pl.CostEstimate(
        flops=2 * B * (img_dim + text_dim) * NUM_CLASSES,
        transcendentals=B * NUM_CLASSES,
        bytes_accessed=(B * (img_dim * img.dtype.itemsize
                             + text_dim * txt.dtype.itemsize
                             + NUM_CLASSES * 4)
                        + 4 * (img_dim + text_dim + 1) * NUM_CLASSES),
    )

    out = pl.pallas_call(
        _ensemble_kernel,
        out_shape=jax.ShapeDtypeStruct((B, NUM_CLASSES), jnp.float32),
        grid=grid,
        in_specs=[
            pl.BlockSpec((tile_b, img_dim), lambda i: (i, 0)),        # image tile
            pl.BlockSpec((tile_b, text_dim), lambda i: (i, 0)),       # text tile
            pl.BlockSpec((img_dim, NUM_CLASSES), lambda i: (0, 0)),   # Wi' (resident)
            pl.BlockSpec((text_dim, NUM_CLASSES), lambda i: (0, 0)),  # Wt' (resident)
            pl.BlockSpec((1, NUM_CLASSES), lambda i: (0, 0)),         # b'  (resident)
        ],
        out_specs=pl.BlockSpec((tile_b, NUM_CLASSES), lambda i: (i, 0)),
        compiler_params=pltpu.CompilerParams(
            dimension_semantics=("parallel",),
            vmem_limit_bytes=VMEM_LIMIT_BYTES),
        cost_estimate=cost,
    )(img, txt, fused["wi_f"], fused["wt_f"], fused["b_f"])

    return out


def init_params(key, img_dim, text_dim):
    ks = jax.random.split(key, 6)
    scale = 0.05
    return {
        "wi": scale * jax.random.normal(ks[0], (img_dim, NUM_CLASSES), jnp.float32),
        "bi": scale * jax.random.normal(ks[1], (NUM_CLASSES,), jnp.float32),
        "wt": scale * jax.random.normal(ks[2], (text_dim, NUM_CLASSES), jnp.float32),
        "bt": scale * jax.random.normal(ks[3], (NUM_CLASSES,), jnp.float32),
        "wo": scale * jax.random.normal(ks[4], (2 * NUM_CLASSES, NUM_CLASSES), jnp.float32),
        "bo": scale * jax.random.normal(ks[5], (NUM_CLASSES,), jnp.float32),
    }


def reference_forward(image_features, text_features, params):
    B = image_features.shape[0]
    img = image_features.reshape(B, -1)
    txt_pred = text_features @ params["wt"] + params["bt"]
    img_pred = img @ params["wi"] + params["bi"]
    feats = jnp.concatenate([txt_pred, img_pred], axis=1)
    logits = feats @ params["wo"] + params["bo"]
    return jax.nn.softmax(logits, axis=1)


if __name__ == "__main__":
    key = jax.random.PRNGKey(0)
    k_img, k_txt, k_par, k_img2, k_txt2 = jax.random.split(key, 5)

    B, C, H, W = 2, 4, 16, 16
    TEXT_DIM = 32

    image_features = jax.random.normal(k_img, (B, C, H, W), jnp.float32)   # NCHW
    text_features = jax.random.normal(k_txt, (B, TEXT_DIM), jnp.float32)
    params = init_params(k_par, C * H * W, TEXT_DIM)
    fused = fuse_params(params)   # hoisted: computed once, reused per forward

    out = ensemble_forward(image_features, text_features, fused)
    out = jax.block_until_ready(out)

    ref = reference_forward(image_features, text_features, params)
    assert out.shape == (B, NUM_CLASSES)
    assert jnp.allclose(out, ref, atol=1e-5, rtol=1e-5)
    assert jnp.allclose(jnp.sum(out, axis=1), jnp.ones((B,)), atol=1e-5)

    # Second check: batch not a multiple of the tile -> exercises the padding-
    # free ragged last block (3 grid steps of 8 rows, last one partial).
    B2 = 20
    image_features2 = jax.random.normal(k_img2, (B2, C, H, W), jnp.float32)
    text_features2 = jax.random.normal(k_txt2, (B2, TEXT_DIM), jnp.float32)
    out2 = jax.block_until_ready(
        ensemble_forward(image_features2, text_features2, fused, tile_b=8))
    ref2 = reference_forward(image_features2, text_features2, params)
    assert out2.shape == (B2, NUM_CLASSES)
    assert jnp.allclose(out2, ref2, atol=1e-5, rtol=1e-5)
    assert jnp.allclose(jnp.sum(out2, axis=1), jnp.ones((B2,)), atol=1e-5)

    print("KERNEL_OK")
</pallas_src>

<mosaic_0001>
module attributes {stable_mosaic.version = 11 : i64} {
  func.func @_ensemble_kernel(%arg0: i32, %arg1: memref<8x1024xf32, #tpu.memory_space<vmem>>, %arg2: memref<8x32xf32, #tpu.memory_space<vmem>>, %arg3: memref<1024x13xf32, #tpu.memory_space<vmem>>, %arg4: memref<32x13xf32, #tpu.memory_space<vmem>>, %arg5: memref<1x13xf32, #tpu.memory_space<vmem>>, %arg6: memref<8x13xf32, #tpu.memory_space<vmem>>) attributes {dimension_semantics = [#tpu.dimension_semantics<parallel>], iteration_bounds = array<i64: 1>, scalar_prefetch = 0 : i64, scratch_operands = 0 : i64, tpu.core_type = #tpu.core_type<tc>, window_params = [{transform_indices = @transform_0, window_bounds = array<i64: 8, 1024>}, {transform_indices = @transform_1, window_bounds = array<i64: 8, 32>}, {pipeline_mode = #tpu.pipeline_mode<synchronous>, transform_indices = @transform_2, window_bounds = array<i64: 1024, 13>}, {pipeline_mode = #tpu.pipeline_mode<synchronous>, transform_indices = @transform_3, window_bounds = array<i64: 32, 13>}, {pipeline_mode = #tpu.pipeline_mode<synchronous>, transform_indices = @transform_4, window_bounds = array<i64: 1, 13>}, {transform_indices = @transform_5, window_bounds = array<i64: 8, 13>}]} {
    %c0 = arith.constant 0 : index
    %c0_0 = arith.constant 0 : index
    %0 = vector.load %arg2[%c0, %c0_0] : memref<8x32xf32, #tpu.memory_space<vmem>>, vector<8x32xf32>
    %c0_1 = arith.constant 0 : index
    %c0_2 = arith.constant 0 : index
    %1 = vector.load %arg4[%c0_1, %c0_2] : memref<32x13xf32, #tpu.memory_space<vmem>>, vector<32x13xf32>
    %cst = arith.constant dense<0.000000e+00> : vector<8x13xf32>
    %2 = tpu.matmul %0, %1, %cst {dimension_numbers = #tpu.dot_dimension_numbers<[1], [0], [0], [1], [0, 0, 1, 1], [], []>} : vector<8x32xf32>, vector<32x13xf32>, vector<8x13xf32> -> vector<8x13xf32>
    %c0_3 = arith.constant 0 : index
    %c0_4 = arith.constant 0 : index
    %3 = vector.load %arg1[%c0_3, %c0_4] : memref<8x1024xf32, #tpu.memory_space<vmem>>, vector<8x1024xf32>
    %c0_5 = arith.constant 0 : index
    %c0_6 = arith.constant 0 : index
    %4 = vector.load %arg3[%c0_5, %c0_6] : memref<1024x13xf32, #tpu.memory_space<vmem>>, vector<1024x13xf32>
    %cst_7 = arith.constant dense<0.000000e+00> : vector<8x13xf32>
    %5 = tpu.matmul %3, %4, %cst_7 {dimension_numbers = #tpu.dot_dimension_numbers<[1], [0], [0], [1], [0, 0, 1, 1], [], []>} : vector<8x1024xf32>, vector<1024x13xf32>, vector<8x13xf32> -> vector<8x13xf32>
    %6 = arith.addf %2, %5 : vector<8x13xf32>
    %c0_8 = arith.constant 0 : index
    %c0_9 = arith.constant 0 : index
    %7 = vector.load %arg5[%c0_8, %c0_9] : memref<1x13xf32, #tpu.memory_space<vmem>>, vector<1x13xf32>
    %8 = vector.broadcast %7 : vector<1x13xf32> to vector<8x13xf32>
    %9 = arith.addf %6, %8 : vector<8x13xf32>
    %cst_10 = arith.constant dense<0xFF800000> : vector<8xf32>
    %10 = vector.multi_reduction <maximumf>, %9, %cst_10 [1] : vector<8x13xf32> to vector<8xf32>
    %11 = vector.shape_cast %10 : vector<8xf32> to vector<8x1xf32>
    %12 = vector.broadcast %11 : vector<8x1xf32> to vector<8x13xf32>
    %13 = arith.subf %9, %12 : vector<8x13xf32>
    %14 = math.exp %13 : vector<8x13xf32>
    %cst_11 = arith.constant dense<0.000000e+00> : vector<8xf32>
    %15 = vector.multi_reduction <add>, %14, %cst_11 [1] : vector<8x13xf32> to vector<8xf32>
    %16 = vector.shape_cast %15 : vector<8xf32> to vector<8x1xf32>
    %17 = tpu.reciprocal %16 : vector<8x1xf32> -> vector<8x1xf32>
    %18 = vector.broadcast %17 : vector<8x1xf32> to vector<8x13xf32>
    %19 = arith.mulf %14, %18 : vector<8x13xf32>
    %c0_12 = arith.constant 0 : index
    %c0_13 = arith.constant 0 : index
    %20 = vector.load %arg6[%c0_12, %c0_13] : memref<8x13xf32, #tpu.memory_space<vmem>>, vector<8x13xf32>
    tpu.vector_store %arg6[%c0_12, %c0_13], %19 {strides = array<i32>} : memref<8x13xf32, #tpu.memory_space<vmem>>, vector<8x13xf32>,
    return
  }
  func.func @transform_0(%arg0: i32) -> (i32, i32) {
    %c0_i32 = arith.constant 0 : i32
    %c0_i32_0 = arith.constant 0 : i32
    return %arg0, %c0_i32 : i32, i32
  }
  func.func @transform_1(%arg0: i32) -> (i32, i32) {
    %c0_i32 = arith.constant 0 : i32
    %c0_i32_0 = arith.constant 0 : i32
    return %arg0, %c0_i32 : i32, i32
  }
  func.func @transform_2(%arg0: i32) -> (i32, i32) {
    %c0_i32 = arith.constant 0 : i32
    %c0_i32_0 = arith.constant 0 : i32
    %c0_i32_1 = arith.constant 0 : i32
    return %c0_i32, %c0_i32_0 : i32, i32
  }
  func.func @transform_3(%arg0: i32) -> (i32, i32) {
    %c0_i32 = arith.constant 0 : i32
    %c0_i32_0 = arith.constant 0 : i32
    %c0_i32_1 = arith.constant 0 : i32
    return %c0_i32, %c0_i32_0 : i32, i32
  }
  func.func @transform_4(%arg0: i32) -> (i32, i32) {
    %c0_i32 = arith.constant 0 : i32
    %c0_i32_0 = arith.constant 0 : i32
    %c0_i32_1 = arith.constant 0 : i32
    return %c0_i32, %c0_i32_0 : i32, i32
  }
  func.func @transform_5(%arg0: i32) -> (i32, i32) {
    %c0_i32 = arith.constant 0 : i32
    %c0_i32_0 = arith.constant 0 : i32
    return %arg0, %c0_i32 : i32, i32
  }
}

</mosaic_0001>

<bundles_post_ra>
// kernel: tpu_custom_call.1
= control target key start
LH: loop header
LB: loop body
LE: loop exit
PB: predicated region body
PF: predicated region fallthrough
CT: control target
= control target key end

     0   :  { %10 = vsyncpa [#allocation3], 0  ;;  %v843_v30 = vmov 1983009808   ;;  %v177_v32 = vlaneseq  ;;  %vm845_vm0 = vmmov 0   ;;  %vm530_vm1 = vcmask 261120   ;;  %s1318_s0 = inlined_call_operand.vmem [shape: f32[2,1024], index: 0, kind: input, shape index: {}]   ;;  %s1319_s1 = inlined_call_operand.vmem [shape: f32[2,32], index: 1, kind: input, shape index: {}]   ;;  %s1320_s2 = inlined_call_operand.vmem [shape: f32[1024,13], index: 2, kind: input, shape index: {}]   ;;  %s1321_s3 = inlined_call_operand.vmem [shape: f32[32,13], index: 3, kind: input, shape index: {}]   ;;  %s1322_s4 = inlined_call_operand.vmem [shape: f32[1,13], index: 4, kind: input, shape index: {}]   ;;  %s1323_s5 = inlined_call_operand.hbm [shape: f32[2,13], index: 5, kind: output, shape index: {}]  }
   0x1   :  { %v65_v0 = vld [vmem:[%s1320_s2 + $0xf8] sm:$0xff]  ;;  %v64_v4 = vld [vmem:[%s1320_s2 + $0xf0] sm:$0xff]  ;;  %v63_v8 = vld [vmem:[%s1320_s2 + $0xe8] sm:$0xff]  ;;  %v175_v31 = vunpack.c.l.s4 %v843_v30  ;;  %vm612_vm2 = vcmask 105472  }
   0x2   :  { %v97_v1 = vld [vmem:[%s1320_s2 + $0x1f8] sm:$0xff]  ;;  %643 = vmatprep.subr.mxu0 %v65_v0  ;;  %v96_v5 = vld [vmem:[%s1320_s2 + $0x1f0] sm:$0xff]  ;;  %v95_v9 = vld [vmem:[%s1320_s2 + $0x1e8] sm:$0xff]  ;;  %v178_v42 = vshrl.u32 %v177_v32, 7 }
   0x3   :  { %678 = vmatprep.subr.mxu1 %v97_v1  ;;  %v49_v2 = vld [vmem:[%s1320_s2 + $0x78] sm:$0xff]  ;;  %v48_v6 = vld [vmem:[%s1320_s2 + $0x70] sm:$0xff]  ;;  %v47_v10 = vld [vmem:[%s1320_s2 + $0x68] sm:$0xff]  ;;  %v176_v41 = vunpack.c.0.s8 %v175_v31 }
   0x4   :  { %v81_v3 = vld [vmem:[%s1320_s2 + $0x178] sm:$0xff]  ;;  %644 = vmatpush3.msra.mxu0 %v49_v2  ;;  %v80_v7 = vld [vmem:[%s1320_s2 + $0x170] sm:$0xff]  ;;  %v79_v11 = vld [vmem:[%s1320_s2 + $0x168] sm:$0xff] }
   0x5   :  { %679 = vmatpush3.msra.mxu1 %v81_v3  ;;  %645 = vmatprep.subr.mxu0 %v64_v4  ;;  %v62_v12 = vld [vmem:[%s1320_s2 + $0xe0] sm:$0xff]  ;;  %v61_v16 = vld [vmem:[%s1320_s2 + $0xd8] sm:$0xff]  ;;  %v60_v20 = vld [vmem:[%s1320_s2 + $0xd0] sm:$0xff]  ;;  %v1029_v55 = vsub.s32 %v176_v41, %v178_v42 }
   0x6   :  { %680 = vmatprep.subr.mxu1 %v96_v5  ;;  %646 = vmatpush3.msra.mxu0 %v48_v6  ;;  %v94_v13 = vld [vmem:[%s1320_s2 + $0x1e0] sm:$0xff]  ;;  %v93_v17 = vld [vmem:[%s1320_s2 + $0x1d8] sm:$0xff]  ;;  %v92_v21 = vld [vmem:[%s1320_s2 + $0x1d0] sm:$0xff] }
   0x7   :  { %681 = vmatpush3.msra.mxu1 %v80_v7  ;;  %647 = vmatprep.subr.mxu0 %v63_v8  ;;  %v46_v14 = vld [vmem:[%s1320_s2 + $0x60] sm:$0xff]  ;;  %v45_v18 = vld [vmem:[%s1320_s2 + $0x58] sm:$0xff]  ;;  %v44_v22 = vld [vmem:[%s1320_s2 + $0x50] sm:$0xff] }
   0x8   :  { %682 = vmatprep.subr.mxu1 %v95_v9  ;;  %v78_v15 = vld [vmem:[%s1320_s2 + $0x160] sm:$0xff]  ;;  %648 = vmatpush3.msra.mxu0 %v47_v10  ;;  %v77_v19 = vld [vmem:[%s1320_s2 + $0x158] sm:$0xff]  ;;  %v76_v23 = vld [vmem:[%s1320_s2 + $0x150] sm:$0xff] }
   0x9   :  { %683 = vmatpush3.msra.mxu1 %v79_v11  ;;  %649 = vmatprep.subr.mxu0 %v62_v12  ;;  %v59_v24 = vld [vmem:[%s1320_s2 + $0xc8] sm:$0xff]  ;;  %v58_v28 = vld [vmem:[%s1320_s2 + $0xc0] sm:$0xff]  ;;  %v57_v35 = vld [vmem:[%s1320_s2 + $0xb8] sm:$0xff] }
   0xa   :  { %684 = vmatprep.subr.mxu1 %v94_v13  ;;  %650 = vmatpush3.msra.mxu0 %v46_v14  ;;  %v91_v25 = vld [vmem:[%s1320_s2 + $0x1c8] sm:$0xff]  ;;  %v90_v29 = vld [vmem:[%s1320_s2 + $0x1c0] sm:$0xff]  ;;  %v89_v36 = vld [vmem:[%s1320_s2 + $0x1b8] sm:$0xff] }
   0xb   :  { %685 = vmatpush3.msra.mxu1 %v78_v15  ;;  %651 = vmatprep.subr.mxu0 %v61_v16  ;;  %v43_v26 = vld [vmem:[%s1320_s2 + $0x48] sm:$0xff]  ;;  %v42_v33 = vld [vmem:[%s1320_s2 + $0x40] sm:$0xff]  ;;  %v41_v37 = vld [vmem:[%s1320_s2 + $0x38] sm:$0xff] }
   0xc   :  { %686 = vmatprep.subr.mxu1 %v93_v17  ;;  %652 = vmatpush3.msra.mxu0 %v45_v18  ;;  %v75_v27 = vld [vmem:[%s1320_s2 + $0x148] sm:$0xff]  ;;  %v74_v34 = vld [vmem:[%s1320_s2 + $0x140] sm:$0xff]  ;;  %v73_v38 = vld [vmem:[%s1320_s2 + $0x138] sm:$0xff] }
   0xd   :  { %687 = vmatpush3.msra.mxu1 %v77_v19  ;;  %653 = vmatprep.subr.mxu0 %v60_v20  ;;  %v56_v39 = vld [vmem:[%s1320_s2 + $0xb0] sm:$0xff]  ;;  %v55_v45 = vld [vmem:[%s1320_s2 + $0xa8] sm:$0xff]  ;;  %v54_v49 = vld [vmem:[%s1320_s2 + $0xa0] sm:$0xff] }
   0xe   :  { %688 = vmatprep.subr.mxu1 %v92_v21  ;;  %654 = vmatpush3.msra.mxu0 %v44_v22  ;;  %v88_v40 = vld [vmem:[%s1320_s2 + $0x1b0] sm:$0xff]  ;;  %v87_v46 = vld [vmem:[%s1320_s2 + $0x1a8] sm:$0xff]  ;;  %v86_v50 = vld [vmem:[%s1320_s2 + $0x1a0] sm:$0xff] }
   0xf   :  { %689 = vmatpush3.msra.mxu1 %v76_v23  ;;  %655 = vmatprep.subr.mxu0 %v59_v24  ;;  %v40_v43 = vld [vmem:[%s1320_s2 + $0x30] sm:$0xff]  ;;  %v39_v47 = vld [vmem:[%s1320_s2 + $0x28] sm:$0xff]  ;;  %v38_v51 = vld [vmem:[%s1320_s2 + $0x20] sm:$0xff] }
  0x10   :  { %690 = vmatprep.subr.mxu1 %v91_v25  ;;  %656 = vmatpush3.msra.mxu0 %v43_v26  ;;  %v72_v44 = vld [vmem:[%s1320_s2 + $0x130] sm:$0xff]  ;;  %v71_v48 = vld [vmem:[%s1320_s2 + $0x128] sm:$0xff]  ;;  %v70_v52 = vld [vmem:[%s1320_s2 + $0x120] sm:$0xff] }
  0x11   :  { %691 = vmatpush3.msra.mxu1 %v75_v27  ;;  %657 = vmatprep.subr.mxu0 %v58_v28  ;;  %v53_v53 = vld [vmem:[%s1320_s2 + $0x98] sm:$0xff]  ;;  %v805_v57 = vld [vmem:[%s1318_s0] ss:$16 sps:$4 sm:$0xff]   ;;  %v809_v60 = vld [vmem:[%s1318_s0 + $0x4] ss:$16 sps:$4 sm:$0xff]  }
  0x12   :  { %692 = vmatprep.subr.mxu1 %v90_v29  ;;  %658 = vmatpush3.msra.mxu0 %v42_v33  ;;  %v85_v54 = vld [vmem:[%s1320_s2 + $0x198] sm:$0xff]  ;;  %v807_v59 = vld [vmem:[%s1318_s0 + $0x20] ss:$16 sps:$4 sm:$0xff]   ;;  %v180_v63 = vrot.slane %v805_v57, %v1029_v55  ;;  %v810_v0 = vld [vmem:[%s1318_s0 + $0x24] ss:$16 sps:$4 sm:$0xff]   ;;  %v187_v4 = vrot.slane %v809_v60, %v1029_v55 }
  0x13   :  { %693 = vmatpush3.msra.mxu1 %v74_v34  ;;  %659 = vmatprep.subr.mxu0 %v57_v35  ;;  %v37_v56 = vld [vmem:[%s1320_s2 + $0x18] sm:$0xff]  ;;  %v52_v61 = vld [vmem:[%s1320_s2 + $0x90] sm:$0xff]  ;;  %v194_v3 = vrot.slane %v807_v59, %v1029_v55  ;;  %v51_v5 = vld [vmem:[%s1320_s2 + $0x88] sm:$0xff]  ;;  %v201_v7 = vrot.slane %v810_v0, %v1029_v55 }
  0x14   :  { %694 = vmatprep.subr.mxu1 %v89_v36  ;;  %660 = vmatpush3.msra.mxu0 %v41_v37  ;;  %v69_v58 = vld [vmem:[%s1320_s2 + $0x118] sm:$0xff]  ;;  %v84_v62 = vld [vmem:[%s1320_s2 + $0x190] sm:$0xff]  ;;  %v83_v6 = vld [vmem:[%s1320_s2 + $0x188] sm:$0xff] }
  0x15   :  { %695 = vmatpush3.msra.mxu1 %v73_v38  ;;  %661 = vmatprep.subr.mxu0 %v56_v39  ;;  %v36_v1 = vld [vmem:[%s1320_s2 + $0x10] sm:$0xff]  ;;  %v35_v8 = vld [vmem:[%s1320_s2 + $0x8] sm:$0xff]  ;;  %v50_v10 = vld [vmem:[%s1320_s2 + $0x80] sm:$0xff]  ;;  %v203_v12 = vcombine.high %v180_v63, %v194_v3  ;;  %v205_v14 = vcombine.high %v187_v4, %v201_v7  ;;  %v202_v16 = vcombine.low %v180_v63, %v194_v3 }
  0x16   :  { %696 = vmatprep.subr.mxu1 %v88_v40  ;;  %662 = vmatpush3.msra.mxu0 %v40_v43  ;;  %v68_v2 = vld [vmem:[%s1320_s2 + $0x110] sm:$0xff]  ;;  %v67_v9 = vld [vmem:[%s1320_s2 + $0x108] sm:$0xff]  ;;  %v82_v11 = vld [vmem:[%s1320_s2 + $0x180] sm:$0xff]  ;;  %v204_v17 = vcombine.low %v187_v4, %v201_v7 }
  0x17   :  { %697 = vmatpush3.msra.mxu1 %v72_v44  ;;  %663 = vmatprep.subr.mxu0 %v55_v45  ;;  %v34_v13 = vld [vmem:[%s1320_s2] sm:$0xff]  ;;  %v129_v18 = vld [vmem:[%s1320_s2 + $0x2f8] sm:$0xff]  ;;  %v128_v22 = vld [vmem:[%s1320_s2 + $0x2f0] sm:$0xff] }
  0x18   :  { %698 = vmatprep.subr.mxu1 %v87_v46  ;;  %664 = vmatpush3.msra.mxu0 %v39_v47  ;;  %v66_v15 = vld [vmem:[%s1320_s2 + $0x100] sm:$0xff]  ;;  %v161_v19 = vld [vmem:[%s1320_s2 + $0x3f8] sm:$0xff]  ;;  %v160_v23 = vld [vmem:[%s1320_s2 + $0x3f0] sm:$0xff] }
  0x19   :  { %699 = vmatpush3.msra.mxu1 %v71_v48  ;;  %665 = vmatprep.subr.mxu0 %v54_v49  ;;  %v113_v20 = vld [vmem:[%s1320_s2 + $0x278] sm:$0xff]  ;;  %v112_v24 = vld [vmem:[%s1320_s2 + $0x270] sm:$0xff]  ;;  %v127_v26 = vld [vmem:[%s1320_s2 + $0x2e8] sm:$0xff] }
  0x1a   :  { %700 = vmatprep.subr.mxu1 %v86_v50  ;;  %666 = vmatpush3.msra.mxu0 %v38_v51  ;;  %v145_v21 = vld [vmem:[%s1320_s2 + $0x378] sm:$0xff]  ;;  %v144_v25 = vld [vmem:[%s1320_s2 + $0x370] sm:$0xff]  ;;  %v159_v27 = vld [vmem:[%s1320_s2 + $0x3e8] sm:$0xff] }
  0x1b   :  { %701 = vmatpush3.msra.mxu1 %v70_v52  ;;  %667 = vmatprep.subr.mxu0 %v53_v53  ;;  %v111_v28 = vld [vmem:[%s1320_s2 + $0x268] sm:$0xff]  ;;  %v126_v30 = vld [vmem:[%s1320_s2 + $0x2e0] sm:$0xff]  ;;  %v125_v34 = vld [vmem:[%s1320_s2 + $0x2d8] sm:$0xff] }
  0x1c   :  { %702 = vmatprep.subr.mxu1 %v85_v54  ;;  %668 = vmatpush3.msra.mxu0 %v37_v56  ;;  %v143_v29 = vld [vmem:[%s1320_s2 + $0x368] sm:$0xff]  ;;  %v158_v31 = vld [vmem:[%s1320_s2 + $0x3e0] sm:$0xff]  ;;  %v157_v35 = vld [vmem:[%s1320_s2 + $0x3d8] sm:$0xff] }
  0x1d   :  { %703 = vmatpush3.msra.mxu1 %v69_v58  ;;  %669 = vmatprep.subr.mxu0 %v52_v61  ;;  %v110_v32 = vld [vmem:[%s1320_s2 + $0x260] sm:$0xff]  ;;  %v109_v36 = vld [vmem:[%s1320_s2 + $0x258] sm:$0xff]  ;;  %v124_v38 = vld [vmem:[%s1320_s2 + $0x2d0] sm:$0xff] }
  0x1e   :  { %704 = vmatprep.subr.mxu1 %v84_v62  ;;  %670 = vmatpush3.msra.mxu0 %v36_v1  ;;  %v142_v33 = vld [vmem:[%s1320_s2 + $0x360] sm:$0xff]  ;;  %v141_v37 = vld [vmem:[%s1320_s2 + $0x358] sm:$0xff]  ;;  %v156_v39 = vld [vmem:[%s1320_s2 + $0x3d0] sm:$0xff] }
  0x1f   :  { %705 = vmatpush3.msra.mxu1 %v68_v2  ;;  %671 = vmatprep.subr.mxu0 %v51_v5  ;;  %v108_v40 = vld [vmem:[%s1320_s2 + $0x250] sm:$0xff]  ;;  %v123_v42 = vld [vmem:[%s1320_s2 + $0x2c8] sm:$0xff]  ;;  %v122_v46 = vld [vmem:[%s1320_s2 + $0x2c0] sm:$0xff] }
  0x20   :  { %706 = vmatprep.subr.mxu1 %v83_v6  ;;  %672 = vmatpush3.msra.mxu0 %v35_v8  ;;  %v140_v41 = vld [vmem:[%s1320_s2 + $0x350] sm:$0xff]  ;;  %v155_v43 = vld [vmem:[%s1320_s2 + $0x3c8] sm:$0xff]  ;;  %v154_v47 = vld [vmem:[%s1320_s2 + $0x3c0] sm:$0xff] }
  0x21   :  { %707 = vmatpush3.msra.mxu1 %v67_v9  ;;  %673 = vmatprep.subr.mxu0 %v50_v10  ;;  %v107_v44 = vld [vmem:[%s1320_s2 + $0x248] sm:$0xff]  ;;  %v106_v48 = vld [vmem:[%s1320_s2 + $0x240] sm:$0xff]  ;;  %v121_v50 = vld [vmem:[%s1320_s2 + $0x2b8] sm:$0xff] }
  0x22   :  { %708 = vmatprep.subr.mxu1 %v82_v11  ;;  %674 = vmatpush3.msra.mxu0 %v34_v13  ;;  %v139_v45 = vld [vmem:[%s1320_s2 + $0x348] sm:$0xff]  ;;  %v138_v49 = vld [vmem:[%s1320_s2 + $0x340] sm:$0xff]  ;;  %v153_v51 = vld [vmem:[%s1320_s2 + $0x3b8] sm:$0xff] }
  0x23   :  { %314 = vmatprep.mubr.f32.mxu0 %v203_v12  ;;  %709 = vmatpush3.msra.mxu1 %v66_v15  ;;  %v105_v52 = vld [vmem:[%s1320_s2 + $0x238] sm:$0xff]  ;;  %v120_v54 = vld [vmem:[%s1320_s2 + $0x2b0] sm:$0xff]  ;;  %v119_v59 = vld [vmem:[%s1320_s2 + $0x2a8] sm:$0xff] }
  0x24   :  { %384 = vmatprep.mubr.f32.mxu1 %v205_v14  ;;  %315 = vmatmul.mubr.f32.vlgmr.msra.gmra.mxu0 %v202_v16  ;;  %v137_v53 = vld [vmem:[%s1320_s2 + $0x338] sm:$0xff]  ;;  %v152_v56 = vld [vmem:[%s1320_s2 + $0x3b0] sm:$0xff]  ;;  %v151_v60 = vld [vmem:[%s1320_s2 + $0x3a8] sm:$0xff] }
  0x25   :  { %385 = vmatmul.mubr.f32.vlgmr.msra.gmra.mxu1 %v204_v17  ;;  %713 = vmatprep.subr.mxu0 %v129_v18  ;;  %v104_v57 = vld [vmem:[%s1320_s2 + $0x230] sm:$0xff]  ;;  %v103_v61 = vld [vmem:[%s1320_s2 + $0x228] sm:$0xff]  ;;  %v118_v63 = vld [vmem:[%s1320_s2 + $0x2a0] sm:$0xff] }
  0x26   :  { %748 = vmatprep.subr.mxu1 %v161_v19  ;;  %714 = vmatpush3.msra.mxu0 %v113_v20  ;;  %v136_v58 = vld [vmem:[%s1320_s2 + $0x330] sm:$0xff]  ;;  %v135_v62 = vld [vmem:[%s1320_s2 + $0x328] sm:$0xff]  ;;  %v150_v0 = vld [vmem:[%s1320_s2 + $0x3a0] sm:$0xff] }
  0x27   :  { %749 = vmatpush3.msra.mxu1 %v145_v21  ;;  %715 = vmatprep.subr.mxu0 %v128_v22  ;;  %v102_v1 = vld [vmem:[%s1320_s2 + $0x220] sm:$0xff]  ;;  %v811_v2 = vld [vmem:[%s1318_s0 + $0x8] ss:$16 sps:$4 sm:$0xff]   ;;  %v815_v5 = vld [vmem:[%s1318_s0 + $0xc] ss:$16 sps:$4 sm:$0xff]  }
  0x28   :  { %750 = vmatprep.subr.mxu1 %v160_v23  ;;  %716 = vmatpush3.msra.mxu0 %v112_v24  ;;  %v813_v3 = vld [vmem:[%s1318_s0 + $0x28] ss:$16 sps:$4 sm:$0xff]   ;;  %v134_v4 = vld [vmem:[%s1320_s2 + $0x320] sm:$0xff]  ;;  %v816_v6 = vld [vmem:[%s1318_s0 + $0x2c] ss:$16 sps:$4 sm:$0xff]   ;;  %v216_v13 = vrot.slane %v811_v2, %v1029_v55  ;;  %v223_v17 = vrot.slane %v815_v5, %v1029_v55 }
  0x29   :  { %751 = vmatpush3.msra.mxu1 %v144_v25  ;;  %717 = vmatprep.subr.mxu0 %v127_v26  ;;  %v117_v7 = vld [vmem:[%s1320_s2 + $0x298] sm:$0xff]  ;;  %v116_v11 = vld [vmem:[%s1320_s2 + $0x290] sm:$0xff]  ;;  %v230_v14 = vrot.slane %v813_v3, %v1029_v55  ;;  %v237_v18 = vrot.slane %v816_v6, %v1029_v55  ;;  %v115_v19 = vld [vmem:[%s1320_s2 + $0x288] sm:$0xff] }
  0x2a   :  { %752 = vmatprep.subr.mxu1 %v159_v27  ;;  %718 = vmatpush3.msra.mxu0 %v111_v28  ;;  %v149_v8 = vld [vmem:[%s1320_s2 + $0x398] sm:$0xff]  ;;  %v148_v12 = vld [vmem:[%s1320_s2 + $0x390] sm:$0xff]  ;;  %v147_v20 = vld [vmem:[%s1320_s2 + $0x388] sm:$0xff] }
  0x2b   :  { %753 = vmatpush3.msra.mxu1 %v143_v29  ;;  %719 = vmatprep.subr.mxu0 %v126_v30  ;;  %v101_v9 = vld [vmem:[%s1320_s2 + $0x218] sm:$0xff]  ;;  %v100_v15 = vld [vmem:[%s1320_s2 + $0x210] sm:$0xff]  ;;  %v99_v21 = vld [vmem:[%s1320_s2 + $0x208] sm:$0xff]  ;;  %v239_v24 = vcombine.high %v216_v13, %v230_v14  ;;  %v241_v26 = vcombine.high %v223_v17, %v237_v18  ;;  %v238_v28 = vcombine.low %v216_v13, %v230_v14 }
  0x2c   :  { %754 = vmatprep.subr.mxu1 %v158_v31  ;;  %720 = vmatpush3.msra.mxu0 %v110_v32  ;;  %v133_v10 = vld [vmem:[%s1320_s2 + $0x318] sm:$0xff]  ;;  %v132_v16 = vld [vmem:[%s1320_s2 + $0x310] sm:$0xff]  ;;  %v131_v55 = vld [vmem:[%s1320_s2 + $0x308] sm:$0xff]  ;;  %v240_v29 = vcombine.low %v223_v17, %v237_v18  ;;  %v844_v31 = vmov 0.0  }
  0x2d   :  { %755 = vmatpush3.msra.mxu1 %v142_v33  ;;  %721 = vmatprep.subr.mxu0 %v125_v34  ;;  %v114_v22 = vld [vmem:[%s1320_s2 + $0x280] sm:$0xff]  ;;  %v25_v30 = vld [vmem:[%s1321_s3 + $0x18] sm:$0xff]  ;;  %v24_v32 = vld [vmem:[%s1321_s3 + $0x10] sm:$0xff] }
  0x2e   :  { %756 = vmatprep.subr.mxu1 %v157_v35  ;;  %722 = vmatpush3.msra.mxu0 %v109_v36  ;;  %v146_v23 = vld [vmem:[%s1320_s2 + $0x380] sm:$0xff]  ;;  %v23_v33 = vld [vmem:[%s1321_s3 + $0x8] sm:$0xff] }
  0x2f   :  { %757 = vmatpush3.msra.mxu1 %v141_v37  ;;  %723 = vmatprep.subr.mxu0 %v124_v38  ;;  %v98_v25 = vld [vmem:[%s1320_s2 + $0x200] sm:$0xff] }
  0x30   :  { %758 = vmatprep.subr.mxu1 %v156_v39  ;;  %724 = vmatpush3.msra.mxu0 %v108_v40  ;;  %v130_v27 = vld [vmem:[%s1320_s2 + $0x300] sm:$0xff] }
  0x31   :  { %759 = vmatpush3.msra.mxu1 %v140_v41  ;;  %725 = vmatprep.subr.mxu0 %v123_v42  ;;  %v22_v34 = vld [vmem:[%s1321_s3] sm:$0xff] }
  0x32   :  { %760 = vmatprep.subr.mxu1 %v155_v43  ;;  %726 = vmatpush3.msra.mxu0 %v107_v44  ;;  %v21_v35 = vld [vmem:[%s1319_s1] sm:$0xff] }
  0x33   :  { %761 = vmatpush3.msra.mxu1 %v139_v45  ;;  %727 = vmatprep.subr.mxu0 %v122_v46 }
  0x34   :  { %762 = vmatprep.subr.mxu1 %v154_v47  ;;  %728 = vmatpush3.msra.mxu0 %v106_v48 }
  0x35   :  { %763 = vmatpush3.msra.mxu1 %v138_v49  ;;  %729 = vmatprep.subr.mxu0 %v121_v50 }
  0x36   :  { %764 = vmatprep.subr.mxu1 %v153_v51  ;;  %730 = vmatpush3.msra.mxu0 %v105_v52  ;;  %v642_v52 = vld [vmem:[%s1322_s4] ss:$0 sm:$0xff] }
  0x37   :  { %765 = vmatpush3.msra.mxu1 %v137_v53  ;;  %731 = vmatprep.subr.mxu0 %v120_v54 }
  0x38   :  { %766 = vmatprep.subr.mxu1 %v152_v56  ;;  %732 = vmatpush3.msra.mxu0 %v104_v57 }
  0x39   :  { %767 = vmatpush3.msra.mxu1 %v136_v58  ;;  %733 = vmatprep.subr.mxu0 %v119_v59 }
  0x3a   :  { %768 = vmatprep.subr.mxu1 %v151_v60  ;;  %734 = vmatpush3.msra.mxu0 %v103_v61 }
  0x3b   :  { %769 = vmatpush3.msra.mxu1 %v135_v62  ;;  %735 = vmatprep.subr.mxu0 %v118_v63 }
  0x3c   :  { %770 = vmatprep.subr.mxu1 %v150_v0  ;;  %736 = vmatpush3.msra.mxu0 %v102_v1 }
  0x3d   :  { %771 = vmatpush3.msra.mxu1 %v134_v4  ;;  %737 = vmatprep.subr.mxu0 %v117_v7 }
  0x3e   :  { %772 = vmatprep.subr.mxu1 %v149_v8  ;;  %738 = vmatpush3.msra.mxu0 %v101_v9 }
  0x3f   :  { %773 = vmatpush3.msra.mxu1 %v133_v10  ;;  %739 = vmatprep.subr.mxu0 %v116_v11 }
  0x40   :  { %774 = vmatprep.subr.mxu1 %v148_v12  ;;  %740 = vmatpush3.msra.mxu0 %v100_v15 }
  0x41   :  { %775 = vmatpush3.msra.mxu1 %v132_v16  ;;  %741 = vmatprep.subr.mxu0 %v115_v19 }
  0x42   :  { %776 = vmatprep.subr.mxu1 %v147_v20  ;;  %742 = vmatpush3.msra.mxu0 %v99_v21 }
  0x43   :  { %777 = vmatpush3.msra.mxu1 %v131_v55  ;;  %743 = vmatprep.subr.mxu0 %v114_v22 }
  0x44   :  { %778 = vmatprep.subr.mxu1 %v146_v23  ;;  %744 = vmatpush3.msra.mxu0 %v98_v25 }
  0x45   :  { %454 = vmatprep.mubr.f32.mxu0 %v239_v24  ;;  %779 = vmatpush3.msra.mxu1 %v130_v27 }
  0x46   :  { %524 = vmatprep.mubr.f32.mxu1 %v241_v26  ;;  %455 = vmatmul.mubr.f32.vlgmr.msra.gmra.mxu0 %v238_v28 }
  0x47   :  { %525 = vmatmul.mubr.f32.vlgmr.msra.gmra.mxu1 %v240_v29  ;;  %788 = vmatprep.subr.mxu0 %v844_v31 }
  0x48   :  { %796 = vmatprep.mubr.msk.f32.mxu0 %vm845_vm0, %v844_v31  ;;  %789 = vmatpush3.msra.mxu0 %v25_v30 }
  0x49   :  { %790 = vmatprep.subr.mxu0 %v844_v31 }
  0x4a   :  { %791 = vmatpush3.msra.mxu0 %v24_v32 }
  0x4b   :  { %792 = vmatprep.subr.mxu0 %v844_v31 }
  0x4c   :  { %793 = vmatpush3.msra.mxu0 %v23_v33 }
  0x4d   :  { %794 = vmatprep.subr.mxu0 %v844_v31 }
  0x4e   :  { %795 = vmatpush3.msra.mxu0 %v22_v34 }
  0x4f   :  { %797 = vmatmul.mubr.msk.f32.vlgmr.msra.gmra.mxu0 %vm530_vm1, %v21_v35 }
  0xe4   :  { %v675_v36 = vpop.f32.mrf.mxu0 }
  0xe5   :  { %v710_v37 = vpop.f32.mrf.mxu1 }
  0xe6   :  { %v676_v38 = vpop.f32.mrf.mxu0 }
  0xe7   :  { %v711_v39 = vpop.f32.mrf.mxu1  ;;  %v677_v40 = vadd.f32 %v676_v38, %v675_v36 }
  0xe8   :  { %v712_v41 = vadd.f32 %v711_v39, %v710_v37 }
  0xea   :  { %v387_v46 = vadd.f32 %v712_v41, %v677_v40 }
 0x106   :  { %v745_v42 = vpop.f32.mrf.mxu0 }
 0x107   :  { %v780_v43 = vpop.f32.mrf.mxu1 }
 0x108   :  { %v746_v44 = vpop.f32.mrf.mxu0 }
 0x109   :  { %v781_v45 = vpop.f32.mrf.mxu1  ;;  %v747_v47 = vadd.f32 %v746_v44, %v745_v42 }
 0x10a   :  { %v782_v49 = vadd.f32 %v781_v45, %v780_v43 }
 0x10b   :  { %v457_v48 = vadd.f32 %v747_v47, %v387_v46 }
 0x10d   :  { %v527_v50 = vadd.f32 %v782_v49, %v457_v48 }
 0x10f   :  { %v600_v51 = vpop.f32.mrf.mxu0 }
 0x110   :  { %v601_v53 = vadd.f32 %v600_v51, %v527_v50 }
 0x111   :  { %v798_v54 = vpop.f32.mrf.mxu0 }
 0x112   :  { %v611_v56 = vadd.f32 %v642_v52, %v601_v53 }
 0x114   :  { %v613_v57 = vsel %vm612_vm2, %v611_v56, -inf }
 0x115   :  { %614 = vmax.xlane.f32.xlu0 %v613_v57 }
 0x19e   :  { %v615_v58 = vpop.xlane.xlu0 %614 }
 0x19f   :  { %v616_v59 = vsub.f32 %v611_v56, %v615_v58 }
 0x1a1   :  { %v617_v60 = vmul.f32 1.442695, %v616_v59 }
 0x1a3   :  { %817 = vpow2.f32 %v617_v60 }
 0x1b0   :  { %v818_v61 = vpop.eup %817 }
 0x1b1   :  { %v619_v62 = vsel %vm612_vm2, %v818_v61, 0.0 }
 0x1b2   :  { %620 = vadd.xlane.f32.xlu0 %v619_v62 }
 0x23b   :  { %v621_v63 = vpop.xlane.xlu0 %620 }
 0x23c   :  { %819 = vrcp.f32 %v621_v63 }
 0x249   :  { %v820_v0 = vpop.eup %819 }
 0x24a   :  { %v623_v1 = vmul.f32 %v820_v0, %v818_v61 }
 0x24c   :  { %624 = vst.msk [vmem:[#allocation2] sm:$0xff] %vm612_vm2, %v623_v1 }
 0x24d   :  { %629 = vsyncadd [#allocation3], 96  ;;  %s846_s4 = smov [#allocation2]  }
 0x24e   :  { %s630_s22 = sshll.u32 %s846_s4, 4  ;;  %s631_s22 = int_to_ptr.vmem [resolvable:$true] %s630_s22 }
 0x24f   :  { %s821_s23 = scalar_lea.vmem %s631_s22, 32  ;;  %s825_s24 = scalar_lea.vmem %s631_s22, 128 }
 0x250   :  { %p822_p0 = scmp.ne.s32.totalorder %s631_s22, %s821_s23  ;;  %p826_p1 = scmp.lt.s32.totalorder %s631_s22, %s631_s22 }
 0x251   :  { %p827_p2 = scmp.lt.s32.totalorder %s825_s24, %s821_s23 }
 0x253   :  { %p828_p3 = por %p827_p2, %p826_p1 }
 0x255   :  { %p829_p4 = pnand %p828_p3, %p822_p0 }
 0x257   :  { %832 = shalt.err (!%p829_p4)
}
 0x258   :  { %s847_s25 = smov 32   ;;  %s848_s26 = smov 2  }
 0x259   :  { %636 = dma.vmem_to_hbm [thread:$0]  %s631_s22, 32, %s1323_s5, [#allocation3], %s847_s25, %s847_s25, %s848_s26  }
 0x25a   :  { %841 = dma.done.wait [#allocation3], 128  }
 0x25b   :  { %842 = vsyncadd [#allocation3], 4294967168 }
 0x25c   :  { %640 = vsyncpa [#allocation3], 1 }

</bundles_post_ra>
